<compile_context>
chip_gen: v7x
topology: tpu7x:2x2x1
jax: 0.10.0
libtpu: 0.0.40
codegen_flags: <defaults>
</compile_context>

<pallas_src>
import functools

import jax
import jax.numpy as jnp
from jax.experimental import pallas as pl
from jax.experimental.pallas import tpu as pltpu


def _round_up(x, m):
    return ((x + m - 1) // m) * m


# ---------------------------------------------------------------------------
# Pallas kernel: (TM, K) @ (K, N) + bias  ->  (TM, N)
# ---------------------------------------------------------------------------
def _patch_proj_kernel(p_ref, w_ref, b_ref, o_ref):
    # p_ref: (TM, K) bf16 im2col'd patches, w_ref: (K, N) bf16 conv weight,
    # b_ref: (1, N) f32 bias, o_ref: (TM, N) f32.
    acc = jnp.dot(p_ref[...], w_ref[...], preferred_element_type=jnp.float32)
    o_ref[...] = (acc + b_ref[...]).astype(o_ref.dtype)


def _patch_proj(patches, w_mat, bias, *, tile_m):
    """patches: (M_pad, K) bf16, w_mat: (K, N) bf16, bias: (1, N) f32
    -> (M_pad, N) f32 via pallas. M_pad must be a multiple of tile_m and
    N a multiple of 128 (lane-dense output)."""
    M_pad, K = patches.shape
    N = w_mat.shape[1]
    grid_m = M_pad // tile_m

    # VMEM budget: double-buffered patch/output tiles + resident weight/bias,
    # with 2x headroom, clamped to [16 MiB, 48 MiB] (fits v7x's 64 MiB VMEM).
    vmem_bytes = (2 * tile_m * K * 2      # patch tiles, bf16, double buffered
                  + K * N * 2             # weight, bf16, resident
                  + 1 * N * 4             # bias, f32, resident
                  + 2 * tile_m * N * 4)   # output tiles, f32, double buffered
    vmem_limit = int(min(max(2 * vmem_bytes, 16 << 20), 48 << 20))

    cost = pl.CostEstimate(
        flops=2 * M_pad * K * N,
        transcendentals=0,
        bytes_accessed=M_pad * K * 2 + K * N * 2 + N * 4 + M_pad * N * 4,
    )

    out = pl.pallas_call(
        _patch_proj_kernel,
        out_shape=jax.ShapeDtypeStruct((M_pad, N), jnp.float32),
        grid_spec=pltpu.PrefetchScalarGridSpec(
            num_scalar_prefetch=0,
            grid=(grid_m,),
            in_specs=[
                pl.BlockSpec((tile_m, K), lambda i: (i, 0)),
                pl.BlockSpec((K, N), lambda i: (0, 0)),   # resident weight
                pl.BlockSpec((1, N), lambda i: (0, 0)),   # resident bias
            ],
            out_specs=pl.BlockSpec((tile_m, N), lambda i: (i, 0)),
        ),
        compiler_params=pltpu.CompilerParams(
            dimension_semantics=("parallel",),
            vmem_limit_bytes=vmem_limit,
        ),
        cost_estimate=cost,
    )(patches, w_mat, bias)
    return out


# ---------------------------------------------------------------------------
# PatchEmbed forward (dim == 2)
# ---------------------------------------------------------------------------
def wrap_pad_2d(x, pad):
    """Replicates WrapConv2d's padding: circular on W, flipped-edge on H."""
    # circular wrap along width (last dim)
    x = jnp.concatenate([x[..., -pad:], x, x[..., :pad]], axis=-1)
    # flip padding along height: lower from first rows, upper from last rows
    lower = jnp.flip(x[:, :, :pad, :], axis=2)
    upper = jnp.flip(x[:, :, -pad:, :], axis=2)
    x = jnp.concatenate([lower, x, upper], axis=2)
    return x


@functools.partial(jax.jit, static_argnames=("patch", "tile_m"))
def patch_embed_forward(x, w_conv, b_conv, *, patch, tile_m=256):
    """x: (B, C, H, W) -> (B, num_patches, embed_dim)."""
    B, C, H, W = x.shape
    k = patch
    pad = k // 2

    # TODO(synk): wrap/flip padding + im2col are plain-JAX glue (XLA fuses them
    # into one producer copy feeding the kernel); the matmul hot path is Pallas.
    xp = wrap_pad_2d(x, pad)                       # (B, C, H+2p, W+2p)
    Hp, Wp = xp.shape[2], xp.shape[3]
    nH, nW = Hp // k, Wp // k                      # = H//k + 1, W//k + 1

    M = B * nH * nW
    K = C * k * k
    embed_dim = w_conv.shape[0]
    N_pad = _round_up(embed_dim, 128)              # lane-dense output

    # im2col (non-overlapping since stride == kernel). Patch flattens in
    # (C, kh, kw) order to match PyTorch's OIHW conv weight layout.
    patches = xp.reshape(B, C, nH, k, nW, k)
    patches = patches.transpose(0, 2, 4, 1, 3, 5)  # (B, nH, nW, C, k, k)
    patches = patches.reshape(M, K)

    # M tile: big MXU-friendly tiles, 16-aligned (bf16 sublane packing),
    # shrunk when the problem is small so grid stays legal.
    tm = min(_round_up(tile_m, 16), _round_up(M, 16))
    M_padded = _round_up(M, tm)
    if M_padded != M:
        patches = jnp.pad(patches, ((0, M_padded - M), (0, 0)))
    patches = patches.astype(jnp.bfloat16)

    w_mat = w_conv.reshape(embed_dim, K).T.astype(jnp.bfloat16)   # (K, N)
    bias = b_conv.reshape(1, embed_dim).astype(jnp.float32)
    if N_pad != embed_dim:
        w_mat = jnp.pad(w_mat, ((0, 0), (0, N_pad - embed_dim)))
        bias = jnp.pad(bias, ((0, 0), (0, N_pad - embed_dim)))

    out = _patch_proj(patches, w_mat, bias, tile_m=tm)  # (M_padded, N_pad) f32
    out = out[:M, :embed_dim].reshape(B, nH * nW, embed_dim)
    return out


# ---------------------------------------------------------------------------
# main
# ---------------------------------------------------------------------------
if __name__ == "__main__":
    # Small config consistent with the module (dim == 2 path).
    B, C, H, W = 2, 4, 16, 16
    patch = 8            # patch_size = [8, 8]; kernel = stride = 8, pad = 4
    embed_dim = 32
    num_patches = (H // patch + 1) * (W // patch + 1)   # 9

    key = jax.random.PRNGKey(0)
    kx, kw, kb = jax.random.split(key, 3)
    x = jax.random.normal(kx, (B, C, H, W), dtype=jnp.float32)

    # Deterministic synthetic Conv2d parameters (PyTorch OIHW layout).
    fan_in = C * patch * patch
    bound = 1.0 / (fan_in ** 0.5)
    w_conv = jax.random.uniform(kw, (embed_dim, C, patch, patch),
                                minval=-bound, maxval=bound,
                                dtype=jnp.float32)
    b_conv = jax.random.uniform(kb, (embed_dim,),
                                minval=-bound, maxval=bound,
                                dtype=jnp.float32)

    out = patch_embed_forward(x, w_conv, b_conv, patch=patch)
    out = jax.block_until_ready(out)
    assert out.shape == (B, num_patches, embed_dim), out.shape

    # Reference: same padding + XLA conv (f32), flatten(2).transpose(1,2).
    xp = wrap_pad_2d(x, patch // 2)
    ref = jax.lax.conv_general_dilated(
        xp, w_conv, window_strides=(patch, patch), padding="VALID",
        dimension_numbers=("NCHW", "OIHW", "NCHW"))
    ref = ref + b_conv[None, :, None, None]
    ref = ref.reshape(B, embed_dim, -1).transpose(0, 2, 1)

    # bf16 operands with f32 accumulation -> loosened tolerance vs f32 conv.
    max_err = float(jnp.max(jnp.abs(out - ref)))
    assert jnp.allclose(out, ref, atol=3e-2, rtol=3e-2), max_err

    print("KERNEL_OK")
</pallas_src>

<mosaic_0001>
module attributes {stable_mosaic.version = 11 : i64} {
  func.func @_patch_proj_kernel(%arg0: i32, %arg1: memref<32x256xbf16, #tpu.memory_space<vmem>>, %arg2: memref<256x128xbf16, #tpu.memory_space<vmem>>, %arg3: memref<1x128xf32, #tpu.memory_space<vmem>>, %arg4: memref<32x128xf32, #tpu.memory_space<vmem>>) attributes {dimension_semantics = [#tpu.dimension_semantics<parallel>], iteration_bounds = array<i64: 1>, scalar_prefetch = 0 : i64, scratch_operands = 0 : i64, tpu.core_type = #tpu.core_type<tc>, window_params = [{transform_indices = @transform_0, window_bounds = array<i64: 32, 256>}, {pipeline_mode = #tpu.pipeline_mode<synchronous>, transform_indices = @transform_1, window_bounds = array<i64: 256, 128>}, {pipeline_mode = #tpu.pipeline_mode<synchronous>, transform_indices = @transform_2, window_bounds = array<i64: 1, 128>}, {transform_indices = @transform_3, window_bounds = array<i64: 32, 128>}]} {
    %c0 = arith.constant 0 : index
    %c0_0 = arith.constant 0 : index
    %0 = vector.load %arg1[%c0, %c0_0] : memref<32x256xbf16, #tpu.memory_space<vmem>>, vector<32x256xbf16>
    %c0_1 = arith.constant 0 : index
    %c0_2 = arith.constant 0 : index
    %1 = vector.load %arg2[%c0_1, %c0_2] : memref<256x128xbf16, #tpu.memory_space<vmem>>, vector<256x128xbf16>
    %cst = arith.constant dense<0.000000e+00> : vector<32x128xf32>
    %2 = tpu.matmul %0, %1, %cst {dimension_numbers = #tpu.dot_dimension_numbers<[1], [0], [0], [1], [0, 0, 1, 1], [], []>} : vector<32x256xbf16>, vector<256x128xbf16>, vector<32x128xf32> -> vector<32x128xf32>
    %c0_3 = arith.constant 0 : index
    %c0_4 = arith.constant 0 : index
    %3 = vector.load %arg3[%c0_3, %c0_4] : memref<1x128xf32, #tpu.memory_space<vmem>>, vector<1x128xf32>
    %4 = vector.broadcast %3 : vector<1x128xf32> to vector<32x128xf32>
    %5 = arith.addf %2, %4 : vector<32x128xf32>
    %c0_5 = arith.constant 0 : index
    %c0_6 = arith.constant 0 : index
    %6 = vector.load %arg4[%c0_5, %c0_6] : memref<32x128xf32, #tpu.memory_space<vmem>>, vector<32x128xf32>
    tpu.vector_store %arg4[%c0_5, %c0_6], %5 {strides = array<i32>} : memref<32x128xf32, #tpu.memory_space<vmem>>, vector<32x128xf32>,
    return
  }
  func.func @transform_0(%arg0: i32) -> (i32, i32) {
    %c0_i32 = arith.constant 0 : i32
    %c0_i32_0 = arith.constant 0 : i32
    return %arg0, %c0_i32 : i32, i32
  }
  func.func @transform_1(%arg0: i32) -> (i32, i32) {
    %c0_i32 = arith.constant 0 : i32
    %c0_i32_0 = arith.constant 0 : i32
    %c0_i32_1 = arith.constant 0 : i32
    return %c0_i32, %c0_i32_0 : i32, i32
  }
  func.func @transform_2(%arg0: i32) -> (i32, i32) {
    %c0_i32 = arith.constant 0 : i32
    %c0_i32_0 = arith.constant 0 : i32
    %c0_i32_1 = arith.constant 0 : i32
    return %c0_i32, %c0_i32_0 : i32, i32
  }
  func.func @transform_3(%arg0: i32) -> (i32, i32) {
    %c0_i32 = arith.constant 0 : i32
    %c0_i32_0 = arith.constant 0 : i32
    return %arg0, %c0_i32 : i32, i32
  }
}

</mosaic_0001>

<bundles_post_ra>
// kernel: patch_embed_forward.1
= control target key start
LH: loop header
LB: loop body
LE: loop exit
PB: predicated region body
PF: predicated region fallthrough
CT: control target
= control target key end

     0   :  { %s413_s1 = inlined_call_operand.vmem [shape: bf16[256,128], index: 1, kind: input, shape index: {}]   ;;  %s414_s0 = inlined_call_operand.vmem [shape: bf16[32,256], index: 0, kind: input, shape index: {}]   ;;  %s415_s2 = inlined_call_operand.vmem [shape: f32[1,128], index: 2, kind: input, shape index: {}]   ;;  %s416_s3 = inlined_call_operand.vmem [shape: f32[32,128], index: 3, kind: output, shape index: {}]  }
   0x1   :  { %v296_v0 = vld [vmem:[%s413_s1 + $0x40] sm:$0xff]   ;;  %v298_v2 = vld [vmem:[%s413_s1 + $0x48] sm:$0xff]   ;;  %v300_v4 = vld [vmem:[%s413_s1 + $0x50] sm:$0xff]  }
   0x2   :  { %v297_v1 = vld [vmem:[%s413_s1] sm:$0xff]   ;;  %252 = vmatprep.subr.bf16.mxu0 %v296_v0  ;;  %280 = vmatprep.subr.bf16.mxu1 %v296_v0  ;;  %v299_v3 = vld [vmem:[%s413_s1 + $0x8] sm:$0xff]   ;;  %v301_v5 = vld [vmem:[%s413_s1 + $0x10] sm:$0xff]  }
   0x3   :  { %253 = vmatpush3.bf16.msra.mxu0 %v297_v1  ;;  %288 = vmatpush3.bf16.msra.mxu1 %v297_v1  ;;  %v302_v6 = vld [vmem:[%s413_s1 + $0x58] sm:$0xff]   ;;  %v304_v8 = vld [vmem:[%s413_s1 + $0x60] sm:$0xff]   ;;  %v306_v10 = vld [vmem:[%s413_s1 + $0x68] sm:$0xff]  }
   0x4   :  { %254 = vmatprep.subr.bf16.mxu0 %v298_v2  ;;  %281 = vmatprep.subr.bf16.mxu1 %v298_v2  ;;  %v303_v7 = vld [vmem:[%s413_s1 + $0x18] sm:$0xff]   ;;  %v305_v9 = vld [vmem:[%s413_s1 + $0x20] sm:$0xff]   ;;  %v307_v13 = vld [vmem:[%s413_s1 + $0x28] sm:$0xff]  }
   0x5   :  { %v314_v11 = vld [vmem:[%s414_s0 + $0x4] ss:$8 sps:$4 sm:$0xff]   ;;  %v317_v12 = vld [vmem:[%s414_s0 + $0x14] ss:$8 sps:$4 sm:$0xff]   ;;  %v312_v18 = vld [vmem:[%s414_s0] ss:$8 sps:$4 sm:$0xff]  }
   0x6   :  { %v308_v14 = vld [vmem:[%s413_s1 + $0x70] sm:$0xff]   ;;  %206 = vmatprep.mubr.bf16.mxu0 %v314_v11  ;;  %214 = vmatprep.mubr.bf16.mxu1 %v317_v12  ;;  %v310_v16 = vld [vmem:[%s413_s1 + $0x78] sm:$0xff]   ;;  %v231_v22 = vld [vmem:[%s415_s2] ss:$0 sm:$0xff] }
   0x7   :  { %255 = vmatpush3.bf16.msra.mxu0 %v299_v3  ;;  %289 = vmatpush3.bf16.msra.mxu1 %v299_v3  ;;  %v309_v15 = vld [vmem:[%s413_s1 + $0x30] sm:$0xff]   ;;  %v311_v17 = vld [vmem:[%s413_s1 + $0x38] sm:$0xff]  }
   0x8   :  { %256 = vmatprep.subr.bf16.mxu0 %v300_v4  ;;  %282 = vmatprep.subr.bf16.mxu1 %v300_v4  ;;  %v315_v19 = vld [vmem:[%s414_s0 + $0x10] ss:$8 sps:$4 sm:$0xff]  }
   0xb   :  { %257 = vmatpush3.bf16.msra.mxu0 %v301_v5  ;;  %290 = vmatpush3.bf16.msra.mxu1 %v301_v5 }
   0xc   :  { %258 = vmatprep.subr.bf16.mxu0 %v302_v6  ;;  %283 = vmatprep.subr.bf16.mxu1 %v302_v6 }
   0xf   :  { %259 = vmatpush3.bf16.msra.mxu0 %v303_v7  ;;  %291 = vmatpush3.bf16.msra.mxu1 %v303_v7 }
  0x10   :  { %260 = vmatprep.subr.bf16.mxu0 %v304_v8  ;;  %284 = vmatprep.subr.bf16.mxu1 %v304_v8 }
  0x13   :  { %261 = vmatpush3.bf16.msra.mxu0 %v305_v9  ;;  %292 = vmatpush3.bf16.msra.mxu1 %v305_v9 }
  0x14   :  { %262 = vmatprep.subr.bf16.mxu0 %v306_v10  ;;  %285 = vmatprep.subr.bf16.mxu1 %v306_v10 }
  0x17   :  { %263 = vmatpush3.bf16.msra.mxu0 %v307_v13  ;;  %293 = vmatpush3.bf16.msra.mxu1 %v307_v13 }
  0x18   :  { %264 = vmatprep.subr.bf16.mxu0 %v308_v14  ;;  %286 = vmatprep.subr.bf16.mxu1 %v308_v14 }
  0x1b   :  { %265 = vmatpush3.bf16.msra.mxu0 %v309_v15  ;;  %294 = vmatpush3.bf16.msra.mxu1 %v309_v15 }
  0x1c   :  { %266 = vmatprep.subr.bf16.mxu0 %v310_v16  ;;  %287 = vmatprep.subr.bf16.mxu1 %v310_v16 }
  0x1f   :  { %267 = vmatpush3.bf16.msra.mxu0 %v311_v17  ;;  %295 = vmatpush3.bf16.msra.mxu1 %v311_v17 }
  0x22   :  { %207 = vmatmul.mubr.bf16.vlgmr.msra.gmra.mrb[0].mxu0 %v312_v18  ;;  %215 = vmatmul.mubr.bf16.vlgmr.msra.gmra.mrb[0].mxu1 %v315_v19 }
  0xf5   :  { %v268_v20 = vpop.f32.mrb[0].mxu0  ;;  %v274_v21 = vpop.f32.mrb[0].mxu1 }
  0xf6   :  { %v269_v23 = vpop.f32.mrb[1].mxu0  ;;  %v275_v24 = vpop.f32.mrb[1].mxu1 }
  0xf7   :  { %v270_v25 = vadd.f32 %v269_v23, %v268_v20  ;;  %v276_v26 = vadd.f32 %v275_v24, %v274_v21  ;;  %v271_v27 = vpop.f32.mrb[2].mxu0  ;;  %v277_v28 = vpop.f32.mrb[2].mxu1 }
  0xf8   :  { %v272_v29 = vpop.f32.mrb[3].mxu0  ;;  %v278_v30 = vpop.f32.mrb[3].mxu1 }
  0xf9   :  { %v209_v31 = vadd.f32 %v270_v25, %v231_v22  ;;  %v217_v32 = vadd.f32 %v276_v26, %v231_v22  ;;  %v273_v33 = vadd.f32 %v272_v29, %v271_v27  ;;  %v279_v34 = vadd.f32 %v278_v30, %v277_v28 }
  0xfb   :  { %223 = vst [vmem:[%s416_s3] sm:$0xff] %v209_v31  ;;  %225 = vst [vmem:[%s416_s3 + $0x10] sm:$0xff] %v217_v32  ;;  %v212_v35 = vadd.f32 %v273_v33, %v231_v22  ;;  %v220_v36 = vadd.f32 %v279_v34, %v231_v22 }
  0xfd   :  { %224 = vst [vmem:[%s416_s3 + $0x8] sm:$0xff] %v212_v35  ;;  %226 = vst [vmem:[%s416_s3 + $0x18] sm:$0xff] %v220_v36 }

</bundles_post_ra>
